<compile_context>
chip_gen: v6e
topology: v6e:2x2x1
jax: 0.10.0
libtpu: 0.0.40
codegen_flags: <defaults>
</compile_context>

<pallas_src>
import functools

import jax
import jax.numpy as jnp
from jax.experimental import pallas as pl
from jax.experimental.pallas import tpu as pltpu


# ----------------------------- Pallas kernel ---------------------------------
def _node_decoder_kernel(net_ref, w_ref, v_ref,
                         feat_ref, center_ref, scale_ref, local_ref,
                         *, nf, geo, p3, col):
    """net_ref: [B, nf]   w_ref: [R, 4*col]   v_ref: [8, col]

    Outputs: feat_ref [B, geo], center_ref [B, 3], scale_ref [B, 1],
             local_ref [B, p3].

    Weight slab layout (columns, each block 128-lane aligned):
      [0*col : ...]  wA  = [w3 | w1 | w2]  -> width geo+3+1
      [1*col : ...]  pw1                    -> width geo
      [2*col : ...]  pw2                    -> width geo
      [3*col : ...]  pw3                    -> width p3
    Vector slab rows: 0: bA=[b3|b1|b2], 1: pb1, 2: g1, 3: bt1,
                      4: pb2, 5: g2, 6: bt2, 7: pb3
    """
    c1 = geo + 4                       # fused stage-1 output width
    net = net_ref[...].astype(jnp.float32)
    b = net.shape[0]
    inv_b = 1.0 / b
    # Ones row reused by all four MXU moment reductions (hoisted once).
    ones_row = jnp.ones((1, b), jnp.float32)

    # ---------------- fused stage 1:  [geo_feat | center | scale] -------------
    xA = (
        jnp.dot(net, w_ref[0:nf, 0:c1], preferred_element_type=jnp.float32)
        + v_ref[0:1, 0:c1]
    )
    geo_feat = xA[:, 0:geo]                        # lane offset 0: feeds matmuls
    center = jnp.tanh(xA[:, geo:geo + 3])          # EUP on 3 lanes only
    scale = jax.nn.sigmoid(xA[:, geo + 3:geo + 4])  # EUP on 1 lane only

    feat_ref[...] = geo_feat.astype(feat_ref.dtype)
    center_ref[...] = center.astype(center_ref.dtype)
    scale_ref[...] = scale.astype(scale_ref.dtype)

    # ---------------- PartDecoder ---------------------------------------------
    def bn_relu(x, gamma, beta):
        # BatchNorm1d training-mode statistics over the WHOLE batch.
        # Column moments on the MXU (ones-row matmuls) instead of sublane
        # reductions; two-pass centered variance (matches the reference and
        # avoids E[x^2]-E[x]^2 cancellation).
        m = jnp.dot(ones_row, x, preferred_element_type=jnp.float32) * inv_b
        xc = x - m
        var = jnp.dot(ones_row, xc * xc, preferred_element_type=jnp.float32) * inv_b
        y = xc * jax.lax.rsqrt(var + 1e-5) * gamma + beta
        return jnp.maximum(y, 0.0)

    h = (
        jnp.dot(geo_feat, w_ref[0:geo, col:col + geo],
                preferred_element_type=jnp.float32)
        + v_ref[1:2, 0:geo]
    )
    h = bn_relu(h, v_ref[2:3, 0:geo], v_ref[3:4, 0:geo])

    h = (
        jnp.dot(h, w_ref[0:geo, 2 * col:2 * col + geo],
                preferred_element_type=jnp.float32)
        + v_ref[4:5, 0:geo]
    )
    h = bn_relu(h, v_ref[5:6, 0:geo], v_ref[6:7, 0:geo])

    local = (
        jnp.dot(h, w_ref[0:geo, 3 * col:3 * col + p3],
                preferred_element_type=jnp.float32)
        + v_ref[7:8, 0:p3]
    )
    local_ref[...] = local.astype(local_ref.dtype)


# ------------------------------ wrapper ---------------------------------------
def node_decoder_forward(net, W, V, *, node_feat, geo_feat, num_point):
    """net: [B, node_feat] f32; W/V: packed params (see pack_params).

    Returns (geo_local [B,P,3], geo_center [B,3], geo_scale [B,1], geo_feat [B,G]).
    """
    B = net.shape[0]
    p3 = num_point * 3
    col = W.shape[1] // 4

    kernel = functools.partial(
        _node_decoder_kernel, nf=node_feat, geo=geo_feat, p3=p3, col=col
    )

    cost = pl.CostEstimate(
        flops=2 * B * (node_feat * (geo_feat + 4)
                       + 2 * geo_feat * geo_feat
                       + geo_feat * p3
                       + 4 * geo_feat),            # 4 ones-row moment matmuls
        transcendentals=4 * B + 2 * geo_feat,      # tanh(3)+sigmoid(1) per row, rsqrt per BN col
        bytes_accessed=4 * (net.size + W.size + V.size
                            + B * (geo_feat + 4 + p3)),
    )

    vmem = pl.BlockSpec(memory_space=pltpu.MemorySpace.VMEM)
    out_shapes = (
        jax.ShapeDtypeStruct((B, geo_feat), jnp.float32),   # geo_feat
        jax.ShapeDtypeStruct((B, 3), jnp.float32),          # geo_center
        jax.ShapeDtypeStruct((B, 1), jnp.float32),          # geo_scale
        jax.ShapeDtypeStruct((B, p3), jnp.float32),         # geo_local (flat)
    )
    feat, center, scale, local = pl.pallas_call(
        kernel,
        out_shape=out_shapes,
        in_specs=[vmem, vmem, vmem],
        out_specs=(vmem, vmem, vmem, vmem),
        compiler_params=pltpu.CompilerParams(
            # Safe on all generations: above v5e's 16 MiB scoped default,
            # equal to the v6e/v7x default, within v7x's 64 MiB physical VMEM.
            vmem_limit_bytes=32 * 1024 * 1024,
        ),
        cost_estimate=cost,
    )(net, W, V)

    # Contiguous row-major [B, p3] -> [B, P, 3] is a metadata-only reshape.
    geo_local = local.reshape(B, num_point, 3)
    return geo_local, center, scale, feat


# --------------------------- parameter packing ---------------------------------
def pack_params(p, node_feat, geo_feat, num_point):
    """Pack 16 small parameters into one weight slab + one vector slab.

    Do this ONCE outside the hot path; the kernel then needs only 3 input DMAs.
    """
    c1 = geo_feat + 4
    p3 = num_point * 3
    col = ((max(c1, geo_feat, p3) + 127) // 128) * 128   # lane-aligned block stride
    rows = max(node_feat, geo_feat)

    def w_block(w, r):
        blk = jnp.zeros((rows, col), jnp.float32)
        return blk.at[:r, : w.shape[1]].set(w)

    wA = jnp.concatenate([p["w3"], p["w1"], p["w2"]], axis=1)    # [nf, geo+3+1]
    W = jnp.concatenate(
        [
            w_block(wA, node_feat),
            w_block(p["pw1"], geo_feat),
            w_block(p["pw2"], geo_feat),
            w_block(p["pw3"], geo_feat),
        ],
        axis=1,
    )                                                            # [rows, 4*col]

    def v_row(v):
        r = jnp.zeros((1, col), jnp.float32)
        return r.at[:, : v.shape[1]].set(v)

    bA = jnp.concatenate([p["b3"], p["b1"], p["b2"]], axis=1)
    V = jnp.concatenate(
        [
            v_row(bA),
            v_row(p["pb1"]), v_row(p["g1"]), v_row(p["bt1"]),
            v_row(p["pb2"]), v_row(p["g2"]), v_row(p["bt2"]),
            v_row(p["pb3"]),
        ],
        axis=0,
    )                                                            # [8, col]
    return W, V


# --------------------------- parameter construction ---------------------------
def make_params(key, node_feat_len, geo_feat_len, num_point):
    """Deterministic synthetic parameters.  Linear weights stored as [in, out]."""
    ks = jax.random.split(key, 16)

    def lin(kw, kb, fan_in, fan_out):
        bound = 1.0 / jnp.sqrt(fan_in)
        w = jax.random.uniform(kw, (fan_in, fan_out), jnp.float32, -bound, bound)
        b = jax.random.uniform(kb, (1, fan_out), jnp.float32, -bound, bound)
        return w, b

    w1, b1 = lin(ks[0], ks[1], node_feat_len, 3)
    w2, b2 = lin(ks[2], ks[3], node_feat_len, 1)
    w3, b3 = lin(ks[4], ks[5], node_feat_len, geo_feat_len)
    pw1, pb1 = lin(ks[6], ks[7], geo_feat_len, geo_feat_len)
    pw2, pb2 = lin(ks[8], ks[9], geo_feat_len, geo_feat_len)
    pw3, pb3 = lin(ks[10], ks[11], geo_feat_len, num_point * 3)

    g1 = 1.0 + 0.1 * jax.random.normal(ks[12], (1, geo_feat_len), jnp.float32)
    bt1 = 0.1 * jax.random.normal(ks[13], (1, geo_feat_len), jnp.float32)
    g2 = 1.0 + 0.1 * jax.random.normal(ks[14], (1, geo_feat_len), jnp.float32)
    bt2 = 0.1 * jax.random.normal(ks[15], (1, geo_feat_len), jnp.float32)

    return dict(
        w1=w1, b1=b1, w2=w2, b2=b2, w3=w3, b3=b3,
        pw1=pw1, pb1=pb1, g1=g1, bt1=bt1,
        pw2=pw2, pb2=pb2, g2=g2, bt2=bt2,
        pw3=pw3, pb3=pb3,
    )


# ------------------------------- reference ------------------------------------
def reference_forward(net, p, *, num_point):
    def bn_relu(x, gamma, beta):
        mean = jnp.mean(x, axis=0, keepdims=True)
        var = jnp.mean((x - mean) ** 2, axis=0, keepdims=True)
        return jnp.maximum((x - mean) / jnp.sqrt(var + 1e-5) * gamma + beta, 0.0)

    center = jnp.tanh(net @ p["w1"] + p["b1"])
    scale = jax.nn.sigmoid(net @ p["w2"] + p["b2"])
    feat = net @ p["w3"] + p["b3"]
    h = bn_relu(feat @ p["pw1"] + p["pb1"], p["g1"], p["bt1"])
    h = bn_relu(h @ p["pw2"] + p["pb2"], p["g2"], p["bt2"])
    local = (h @ p["pw3"] + p["pb3"]).reshape(net.shape[0], num_point, 3)
    return local, center, scale, feat


# --------------------------------- main ----------------------------------------
if __name__ == "__main__":
    B = 64              # whole batch lives in one VMEM block (exact BN stats)
    NODE_FEAT = 32
    GEO_FEAT = 32
    NUM_POINT = 16

    key = jax.random.PRNGKey(0)
    k_in, k_par = jax.random.split(key)
    net = jax.random.normal(k_in, (B, NODE_FEAT), jnp.float32)
    params = make_params(k_par, NODE_FEAT, GEO_FEAT, NUM_POINT)

    # Pack params once (outside the jitted hot path).
    W, V = pack_params(params, NODE_FEAT, GEO_FEAT, NUM_POINT)
    W, V = jax.block_until_ready((W, V))

    fwd = jax.jit(
        functools.partial(
            node_decoder_forward,
            node_feat=NODE_FEAT, geo_feat=GEO_FEAT, num_point=NUM_POINT,
        )
    )
    geo_local, geo_center, geo_scale, geo_feat = fwd(net, W, V)
    jax.block_until_ready((geo_local, geo_center, geo_scale, geo_feat))

    # sanity check against pure-JAX reference
    ref = reference_forward(net, params, num_point=NUM_POINT)
    for got, want in zip((geo_local, geo_center, geo_scale, geo_feat), ref):
        assert got.shape == want.shape, (got.shape, want.shape)
        assert float(jnp.max(jnp.abs(got - want))) < 1e-4

    print("KERNEL_OK")
</pallas_src>

<mosaic_0001>
module attributes {stable_mosaic.version = 11 : i64} {
  func.func @_node_decoder_kernel(%arg0: memref<64x32xf32, #tpu.memory_space<vmem>>, %arg1: memref<32x512xf32, #tpu.memory_space<vmem>>, %arg2: memref<8x128xf32, #tpu.memory_space<vmem>>, %arg3: memref<64x32xf32, #tpu.memory_space<vmem>>, %arg4: memref<64x3xf32, #tpu.memory_space<vmem>>, %arg5: memref<64x1xf32, #tpu.memory_space<vmem>>, %arg6: memref<64x48xf32, #tpu.memory_space<vmem>>) attributes {dimension_semantics = [], scalar_prefetch = 0 : i64, scratch_operands = 0 : i64, tpu.core_type = #tpu.core_type<tc>} {
    %c0 = arith.constant 0 : index
    %c0_0 = arith.constant 0 : index
    %0 = vector.load %arg0[%c0, %c0_0] : memref<64x32xf32, #tpu.memory_space<vmem>>, vector<64x32xf32>
    %cst = arith.constant 1.000000e+00 : f32
    %1 = vector.broadcast %cst : f32 to vector<1x64xf32>
    %c0_1 = arith.constant 0 : index
    %c0_2 = arith.constant 0 : index
    %2 = vector.load %arg1[%c0_1, %c0_2] : memref<32x512xf32, #tpu.memory_space<vmem>>, vector<32x36xf32>
    %cst_3 = arith.constant dense<0.000000e+00> : vector<64x36xf32>
    %3 = tpu.matmul %0, %2, %cst_3 {dimension_numbers = #tpu.dot_dimension_numbers<[1], [0], [0], [1], [0, 0, 1, 1], [], []>} : vector<64x32xf32>, vector<32x36xf32>, vector<64x36xf32> -> vector<64x36xf32>
    %c0_4 = arith.constant 0 : index
    %c0_5 = arith.constant 0 : index
    %4 = vector.load %arg2[%c0_4, %c0_5] : memref<8x128xf32, #tpu.memory_space<vmem>>, vector<1x36xf32>
    %5 = vector.broadcast %4 : vector<1x36xf32> to vector<64x36xf32>
    %6 = arith.addf %3, %5 : vector<64x36xf32>
    %7 = vector.extract_strided_slice %6 {offsets = [0, 0], sizes = [64, 32], strides = [1, 1]} : vector<64x36xf32> to vector<64x32xf32>
    %8 = vector.extract_strided_slice %6 {offsets = [0, 32], sizes = [64, 3], strides = [1, 1]} : vector<64x36xf32> to vector<64x3xf32>
    %9 = math.tanh %8 : vector<64x3xf32>
    %10 = vector.extract_strided_slice %6 {offsets = [0, 35], sizes = [64, 1], strides = [1, 1]} : vector<64x36xf32> to vector<64x1xf32>
    %11 = arith.negf %10 : vector<64x1xf32>
    %12 = math.exp %11 : vector<64x1xf32>
    %cst_6 = arith.constant 1.000000e+00 : f32
    %13 = vector.broadcast %cst_6 : f32 to vector<64x1xf32>
    %14 = arith.addf %13, %12 : vector<64x1xf32>
    %15 = arith.divf %13, %14 : vector<64x1xf32>
    %c0_7 = arith.constant 0 : index
    %c0_8 = arith.constant 0 : index
    %16 = vector.load %arg3[%c0_7, %c0_8] : memref<64x32xf32, #tpu.memory_space<vmem>>, vector<64x32xf32>
    tpu.vector_store %arg3[%c0_7, %c0_8], %7 {strides = array<i32>} : memref<64x32xf32, #tpu.memory_space<vmem>>, vector<64x32xf32>,
    %c0_9 = arith.constant 0 : index
    %c0_10 = arith.constant 0 : index
    %17 = vector.load %arg4[%c0_9, %c0_10] : memref<64x3xf32, #tpu.memory_space<vmem>>, vector<64x3xf32>
    tpu.vector_store %arg4[%c0_9, %c0_10], %9 {strides = array<i32>} : memref<64x3xf32, #tpu.memory_space<vmem>>, vector<64x3xf32>,
    %c0_11 = arith.constant 0 : index
    %c0_12 = arith.constant 0 : index
    %18 = vector.load %arg5[%c0_11, %c0_12] : memref<64x1xf32, #tpu.memory_space<vmem>>, vector<64x1xf32>
    tpu.vector_store %arg5[%c0_11, %c0_12], %15 {strides = array<i32>} : memref<64x1xf32, #tpu.memory_space<vmem>>, vector<64x1xf32>,
    %c0_13 = arith.constant 0 : index
    %c128 = arith.constant 128 : index
    %19 = vector.load %arg1[%c0_13, %c128] : memref<32x512xf32, #tpu.memory_space<vmem>>, vector<32x32xf32>
    %cst_14 = arith.constant dense<0.000000e+00> : vector<64x32xf32>
    %20 = tpu.matmul %7, %19, %cst_14 {dimension_numbers = #tpu.dot_dimension_numbers<[1], [0], [0], [1], [0, 0, 1, 1], [], []>} : vector<64x32xf32>, vector<32x32xf32>, vector<64x32xf32> -> vector<64x32xf32>
    %c1 = arith.constant 1 : index
    %c0_15 = arith.constant 0 : index
    %21 = vector.load %arg2[%c1, %c0_15] : memref<8x128xf32, #tpu.memory_space<vmem>>, vector<1x32xf32>
    %22 = vector.broadcast %21 : vector<1x32xf32> to vector<64x32xf32>
    %23 = arith.addf %20, %22 : vector<64x32xf32>
    %c2 = arith.constant 2 : index
    %c0_16 = arith.constant 0 : index
    %24 = vector.load %arg2[%c2, %c0_16] : memref<8x128xf32, #tpu.memory_space<vmem>>, vector<1x32xf32>
    %c3 = arith.constant 3 : index
    %c0_17 = arith.constant 0 : index
    %25 = vector.load %arg2[%c3, %c0_17] : memref<8x128xf32, #tpu.memory_space<vmem>>, vector<1x32xf32>
    %cst_18 = arith.constant dense<0.000000e+00> : vector<1x32xf32>
    %26 = tpu.matmul %1, %23, %cst_18 {dimension_numbers = #tpu.dot_dimension_numbers<[1], [0], [0], [1], [0, 0, 1, 1], [], []>} : vector<1x64xf32>, vector<64x32xf32>, vector<1x32xf32> -> vector<1x32xf32>
    %cst_19 = arith.constant 1.562500e-02 : f32
    %27 = vector.broadcast %cst_19 : f32 to vector<1x32xf32>
    %28 = arith.mulf %26, %27 : vector<1x32xf32>
    %29 = vector.broadcast %28 : vector<1x32xf32> to vector<64x32xf32>
    %30 = arith.subf %23, %29 : vector<64x32xf32>
    %31 = arith.mulf %30, %30 : vector<64x32xf32>
    %cst_20 = arith.constant dense<0.000000e+00> : vector<1x32xf32>
    %32 = tpu.matmul %1, %31, %cst_20 {dimension_numbers = #tpu.dot_dimension_numbers<[1], [0], [0], [1], [0, 0, 1, 1], [], []>} : vector<1x64xf32>, vector<64x32xf32>, vector<1x32xf32> -> vector<1x32xf32>
    %cst_21 = arith.constant 1.562500e-02 : f32
    %33 = vector.broadcast %cst_21 : f32 to vector<1x32xf32>
    %34 = arith.mulf %32, %33 : vector<1x32xf32>
    %cst_22 = arith.constant 9.99999974E-6 : f32
    %35 = vector.broadcast %cst_22 : f32 to vector<1x32xf32>
    %36 = arith.addf %34, %35 : vector<1x32xf32>
    %37 = math.rsqrt %36 : vector<1x32xf32>
    %38 = vector.broadcast %37 : vector<1x32xf32> to vector<64x32xf32>
    %39 = arith.mulf %30, %38 : vector<64x32xf32>
    %40 = vector.broadcast %24 : vector<1x32xf32> to vector<64x32xf32>
    %41 = arith.mulf %39, %40 : vector<64x32xf32>
    %42 = vector.broadcast %25 : vector<1x32xf32> to vector<64x32xf32>
    %43 = arith.addf %41, %42 : vector<64x32xf32>
    %cst_23 = arith.constant 0.000000e+00 : f32
    %44 = vector.broadcast %cst_23 : f32 to vector<64x32xf32>
    %45 = arith.maximumf %43, %44 : vector<64x32xf32>
    %c0_24 = arith.constant 0 : index
    %c256 = arith.constant 256 : index
    %46 = vector.load %arg1[%c0_24, %c256] : memref<32x512xf32, #tpu.memory_space<vmem>>, vector<32x32xf32>
    %cst_25 = arith.constant dense<0.000000e+00> : vector<64x32xf32>
    %47 = tpu.matmul %45, %46, %cst_25 {dimension_numbers = #tpu.dot_dimension_numbers<[1], [0], [0], [1], [0, 0, 1, 1], [], []>} : vector<64x32xf32>, vector<32x32xf32>, vector<64x32xf32> -> vector<64x32xf32>
    %c4 = arith.constant 4 : index
    %c0_26 = arith.constant 0 : index
    %48 = vector.load %arg2[%c4, %c0_26] : memref<8x128xf32, #tpu.memory_space<vmem>>, vector<1x32xf32>
    %49 = vector.broadcast %48 : vector<1x32xf32> to vector<64x32xf32>
    %50 = arith.addf %47, %49 : vector<64x32xf32>
    %c5 = arith.constant 5 : index
    %c0_27 = arith.constant 0 : index
    %51 = vector.load %arg2[%c5, %c0_27] : memref<8x128xf32, #tpu.memory_space<vmem>>, vector<1x32xf32>
    %c6 = arith.constant 6 : index
    %c0_28 = arith.constant 0 : index
    %52 = vector.load %arg2[%c6, %c0_28] : memref<8x128xf32, #tpu.memory_space<vmem>>, vector<1x32xf32>
    %cst_29 = arith.constant dense<0.000000e+00> : vector<1x32xf32>
    %53 = tpu.matmul %1, %50, %cst_29 {dimension_numbers = #tpu.dot_dimension_numbers<[1], [0], [0], [1], [0, 0, 1, 1], [], []>} : vector<1x64xf32>, vector<64x32xf32>, vector<1x32xf32> -> vector<1x32xf32>
    %cst_30 = arith.constant 1.562500e-02 : f32
    %54 = vector.broadcast %cst_30 : f32 to vector<1x32xf32>
    %55 = arith.mulf %53, %54 : vector<1x32xf32>
    %56 = vector.broadcast %55 : vector<1x32xf32> to vector<64x32xf32>
    %57 = arith.subf %50, %56 : vector<64x32xf32>
    %58 = arith.mulf %57, %57 : vector<64x32xf32>
    %cst_31 = arith.constant dense<0.000000e+00> : vector<1x32xf32>
    %59 = tpu.matmul %1, %58, %cst_31 {dimension_numbers = #tpu.dot_dimension_numbers<[1], [0], [0], [1], [0, 0, 1, 1], [], []>} : vector<1x64xf32>, vector<64x32xf32>, vector<1x32xf32> -> vector<1x32xf32>
    %cst_32 = arith.constant 1.562500e-02 : f32
    %60 = vector.broadcast %cst_32 : f32 to vector<1x32xf32>
    %61 = arith.mulf %59, %60 : vector<1x32xf32>
    %cst_33 = arith.constant 9.99999974E-6 : f32
    %62 = vector.broadcast %cst_33 : f32 to vector<1x32xf32>
    %63 = arith.addf %61, %62 : vector<1x32xf32>
    %64 = math.rsqrt %63 : vector<1x32xf32>
    %65 = vector.broadcast %64 : vector<1x32xf32> to vector<64x32xf32>
    %66 = arith.mulf %57, %65 : vector<64x32xf32>
    %67 = vector.broadcast %51 : vector<1x32xf32> to vector<64x32xf32>
    %68 = arith.mulf %66, %67 : vector<64x32xf32>
    %69 = vector.broadcast %52 : vector<1x32xf32> to vector<64x32xf32>
    %70 = arith.addf %68, %69 : vector<64x32xf32>
    %cst_34 = arith.constant 0.000000e+00 : f32
    %71 = vector.broadcast %cst_34 : f32 to vector<64x32xf32>
    %72 = arith.maximumf %70, %71 : vector<64x32xf32>
    %c0_35 = arith.constant 0 : index
    %c384 = arith.constant 384 : index
    %73 = vector.load %arg1[%c0_35, %c384] : memref<32x512xf32, #tpu.memory_space<vmem>>, vector<32x48xf32>
    %cst_36 = arith.constant dense<0.000000e+00> : vector<64x48xf32>
    %74 = tpu.matmul %72, %73, %cst_36 {dimension_numbers = #tpu.dot_dimension_numbers<[1], [0], [0], [1], [0, 0, 1, 1], [], []>} : vector<64x32xf32>, vector<32x48xf32>, vector<64x48xf32> -> vector<64x48xf32>
    %c7 = arith.constant 7 : index
    %c0_37 = arith.constant 0 : index
    %75 = vector.load %arg2[%c7, %c0_37] : memref<8x128xf32, #tpu.memory_space<vmem>>, vector<1x48xf32>
    %76 = vector.broadcast %75 : vector<1x48xf32> to vector<64x48xf32>
    %77 = arith.addf %74, %76 : vector<64x48xf32>
    %c0_38 = arith.constant 0 : index
    %c0_39 = arith.constant 0 : index
    %78 = vector.load %arg6[%c0_38, %c0_39] : memref<64x48xf32, #tpu.memory_space<vmem>>, vector<64x48xf32>
    tpu.vector_store %arg6[%c0_38, %c0_39], %77 {strides = array<i32>} : memref<64x48xf32, #tpu.memory_space<vmem>>, vector<64x48xf32>,
    return
  }
}

</mosaic_0001>

<bundles_post_ra>
// kernel: node_decoder_forward.1
= control target key start
LH: loop header
LB: loop body
LE: loop exit
PB: predicated region body
PF: predicated region fallthrough
CT: control target
= control target key end

     0   :  { %12 = vsyncpa [#allocation3], 0  ;;  %s1571_s21 = smov [#allocation2]   ;;  %s1912_s0 = inlined_call_operand.vmem [shape: f32[64,32], index: 0, kind: input, shape index: {}]   ;;  %s1913_s1 = inlined_call_operand.hbm [shape: f32[32,512], index: 1, kind: input, shape index: {}]   ;;  %s1914_s2 = inlined_call_operand.vmem [shape: f32[8,128], index: 2, kind: input, shape index: {}]   ;;  %s1915_s3 = inlined_call_operand.vmem [shape: f32[64,32], index: 3, kind: output, shape index: {0}]   ;;  %s1916_s4 = inlined_call_operand.vmem [shape: f32[64,3], index: 4, kind: output, shape index: {1}]   ;;  %s1917_s5 = inlined_call_operand.vmem [shape: f32[64,1], index: 5, kind: output, shape index: {2}]   ;;  %s1918_s6 = inlined_call_operand.vmem [shape: f32[64,48], index: 6, kind: output, shape index: {3}]  }
   0x1   :  { %s20_s22 = sshll.u32 %s1571_s21, 4  ;;  %s21_s22 = int_to_ptr.vmem [resolvable:$true] %s20_s22 }
   0x2   :  { %s1557_s23 = scalar_lea.vmem %s21_s22, 2048  ;;  %p1562_p1 = scmp.lt.s32.totalorder %s21_s22, %s21_s22 }
   0x3   :  { %p1558_p0 = scmp.ne.s32.totalorder %s21_s22, %s1557_s23  ;;  %p1563_p2 = scmp.lt.s32.totalorder %s1557_s23, %s1557_s23 }
   0x5   :  { %p1564_p3 = por %p1563_p2, %p1562_p1 }
   0x7   :  { %p1565_p4 = pnand %p1564_p3, %p1558_p0 }
   0x9   :  { %1568 = shalt.err (!%p1565_p4)
}
   0xa   :  { %s1572_s24 = smov 512   ;;  %s1573_s25 = smov 32  }
   0xb   :  { %26 = dma.hbm_to_vmem [thread:$0]  %s1913_s1, 2048, %s21_s22, [#allocation3], %s1572_s24, %s1572_s24, %s1573_s25  }
   0xc   :  { %1569 = dma.done.wait [#allocation3], 2048  }
   0xd   :  { %1570 = vsyncadd [#allocation3], 4294965248  ;;  %vm49_vm0 = vcmask 261120   ;;  %v43_v0 = vld [vmem:[#allocation2 + $0x60] sm:$0xff]  ;;  %v328_v5 = vld [vmem:[#allocation2 + $0x68] sm:$0xff]  ;;  %s1574_s11 = smov 96  }
   0xe   :  { %v42_v1 = vld [vmem:[#allocation2 + $0x40] sm:$0xff]  ;;  %1325 = vmatprep.subr.mxu0 %v43_v0  ;;  %1345 = vmatprep.subr.mxu1 %v328_v5  ;;  %v33_v6 = vld [vmem:[%s1912_s0 + $0x8] sm:$0xff]  ;;  %v34_v7 = vld [vmem:[%s1912_s0 + $0x10] sm:$0xff]  ;;  %vm1577_vm1 = vmmov 0   ;;  %vm275_vm2 = vcmask 23552   ;;  %vm316_vm3 = vcmask 7168  }
   0xf   :  { %v32_v2 = vld [vmem:[%s1912_s0] sm:$0xff]  ;;  %1326 = vmatpush3.msra.mxu0 %v43_v0  ;;  %1346 = vmatpush3.msra.mxu1 %v328_v5  ;;  %v35_v8 = vld [vmem:[%s1912_s0 + $0x18] sm:$0xff]  ;;  %v37_v10 = vld [vmem:[%s1912_s0 + $0x28] sm:$0xff]  ;;  %vm465_vm4 = vcmask 523264   ;;  %vm1163_vm5 = vcmask 392192  }
  0x10   :  { %v41_v3 = vld [vmem:[#allocation2 + $0x20] sm:$0xff]  ;;  %1333 = vmatprep.mubr.msk.f32.mxu0 %vm49_vm0, %v32_v2  ;;  %1327 = vmatprep.subr.mxu0 %v42_v1  ;;  %v38_v11 = vld [vmem:[%s1912_s0 + $0x30] sm:$0xff]  ;;  %v39_v12 = vld [vmem:[%s1912_s0 + $0x38] sm:$0xff] }
  0x11   :  { %1328 = vmatpush3.msra.mxu0 %v42_v1  ;;  %v40_v4 = vld [vmem:[#allocation2] sm:$0xff]  ;;  %v327_v13 = vld [vmem:[#allocation2 + $0x48] sm:$0xff] }
  0x12   :  { %1329 = vmatprep.subr.mxu0 %v41_v3  ;;  %v36_v9 = vld [vmem:[%s1912_s0 + $0x20] sm:$0xff]  ;;  %1347 = vmatprep.subr.mxu1 %v327_v13  ;;  %v326_v14 = vld [vmem:[#allocation2 + $0x28] sm:$0xff] }
  0x13   :  { %1330 = vmatpush3.msra.mxu0 %v41_v3  ;;  %1348 = vmatpush3.msra.mxu1 %v327_v13  ;;  %v325_v15 = vld [vmem:[#allocation2 + $0x8] sm:$0xff]  ;;  %v1189_v16 = vld [vmem:[%s1914_s2] ss:$0 sm:$0xff] }
  0x14   :  { %1331 = vmatprep.subr.mxu0 %v40_v4  ;;  %1349 = vmatprep.subr.mxu1 %v326_v14 }
  0x15   :  { %1332 = vmatpush3.msra.mxu0 %v40_v4  ;;  %1350 = vmatpush3.msra.mxu1 %v326_v14 }
  0x16   :  { %1334 = vmatmul.mubr.msk.f32.vlgmr.msra.gmra.mxu0 %vm49_vm0, %v33_v6  ;;  %1351 = vmatprep.subr.mxu1 %v325_v15 }
  0x17   :  { %1336 = vmatprep.mubr.msk.f32.mxu0 %vm49_vm0, %v34_v7  ;;  %1352 = vmatpush3.msra.mxu1 %v325_v15 }
  0x1a   :  { %1337 = vmatmul.mubr.msk.f32.gmra.mxu0 %vm49_vm0, %v35_v8 }
  0x1b   :  { %1339 = vmatprep.mubr.msk.f32.mxu0 %vm49_vm0, %v36_v9  ;;  %v1576_v9 = vmov 0.0  }
  0x1c   :  { %1365 = vmatprep.subr.mxu0 %v1576_v9  ;;  %1384 = vmatprep.subr.mxu1 %v1576_v9 }
  0x1e   :  { %1340 = vmatmul.mubr.msk.f32.gmra.mxu0 %vm49_vm0, %v37_v10 }
  0x1f   :  { %1342 = vmatprep.mubr.msk.f32.mxu0 %vm49_vm0, %v38_v11 }
  0x22   :  { %1343 = vmatmul.mubr.msk.f32.gmra.mxu0 %vm49_vm0, %v39_v12 }
  0x23   :  { %1381 = vmatprep.mubr.msk.f32.mxu0 %vm1577_vm1, %v1576_v9 }
  0xd6   :  { %v1335_v17 = vpop.f32.mrf.mxu0 }
  0xd7   :  { %v146_v18 = vadd.f32 %v1335_v17, %v1189_v16 }
  0xd8   :  { %v140_v19 = vpop.f32.mrf.mxu0 }
  0xd9   :  { %1497 = vtanh.f32 %v146_v18  ;;  %v1199_v20 = vmul.f32 -1.442695, %v146_v18  ;;  %236 = vst.msk [vmem:[%s1915_s3 + $0x8] sm:$0xff] %vm49_vm0, %v146_v18  ;;  %v141_v21 = vadd.f32 %v1189_v16, %v140_v19 }
  0xda   :  { %v1338_v22 = vpop.f32.mrf.mxu0 }
  0xdb   :  { %1499 = vpow2.f32 %v1199_v20  ;;  %v1198_v23 = vmul.f32 -1.442695, %v141_v21  ;;  %235 = vst.msk [vmem:[%s1915_s3] sm:$0xff] %vm49_vm0, %v141_v21  ;;  %v156_v24 = vadd.f32 %v1338_v22, %v1189_v16  ;;  %1353 = vmatprep.mubr.msk.f32.mxu1 %vm49_vm0, %v141_v21 }
  0xdc   :  { %1501 = vtanh.f32 %v141_v21  ;;  %v150_v25 = vpop.f32.mrf.mxu0  ;;  %1354 = vmatmul.mubr.msk.f32.vlgmr.msra.gmra.mxu1 %vm49_vm0, %v146_v18 }
  0xdd   :  { %1503 = vpow2.f32 %v1198_v23  ;;  %v1201_v26 = vmul.f32 -1.442695, %v156_v24  ;;  %238 = vst.msk [vmem:[%s1915_s3 + $0x18] sm:$0xff] %vm49_vm0, %v156_v24  ;;  %v151_v27 = vadd.f32 %v1189_v16, %v150_v25 }
  0xde   :  { %1505 = vtanh.f32 %v156_v24  ;;  %v1341_v28 = vpop.f32.mrf.mxu0 }
  0xdf   :  { %1507 = vpow2.f32 %v1201_v26  ;;  %v1200_v29 = vmul.f32 -1.442695, %v151_v27  ;;  %237 = vst.msk [vmem:[%s1915_s3 + $0x10] sm:$0xff] %vm49_vm0, %v151_v27  ;;  %v166_v30 = vadd.f32 %v1341_v28, %v1189_v16  ;;  %1356 = vmatprep.mubr.msk.f32.mxu1 %vm49_vm0, %v151_v27 }
  0xe0   :  { %v160_v31 = vpop.f32.mrf.mxu0  ;;  %1357 = vmatmul.mubr.msk.f32.gmra.mxu1 %vm49_vm0, %v156_v24 }
  0xe1   :  { %1509 = vpow2.f32 %v1200_v29  ;;  %v1203_v32 = vmul.f32 -1.442695, %v166_v30  ;;  %240 = vst.msk [vmem:[%s1915_s3 + $0x28] sm:$0xff] %vm49_vm0, %v166_v30  ;;  %v161_v33 = vadd.f32 %v1189_v16, %v160_v31 }
  0xe2   :  { %1511 = vtanh.f32 %v151_v27  ;;  %v1344_v34 = vpop.f32.mrf.mxu0 }
  0xe3   :  { %1513 = vpow2.f32 %v1203_v32  ;;  %v1202_v35 = vmul.f32 -1.442695, %v161_v33  ;;  %239 = vst.msk [vmem:[%s1915_s3 + $0x20] sm:$0xff] %vm49_vm0, %v161_v33  ;;  %v176_v36 = vadd.f32 %v1344_v34, %v1189_v16  ;;  %1359 = vmatprep.mubr.msk.f32.mxu1 %vm49_vm0, %v161_v33  ;;  %v1206_v32 = vld [vmem:[%s1914_s2 + $0x1] ss:$0 sm:$0xff] }
  0xe4   :  { %1515 = vtanh.f32 %v161_v33  ;;  %v170_v37 = vpop.f32.mrf.mxu0  ;;  %1360 = vmatmul.mubr.msk.f32.gmra.mxu1 %vm49_vm0, %v166_v30 }
  0xe5   :  { %1517 = vpow2.f32 %v1202_v35  ;;  %v1205_v38 = vmul.f32 -1.442695, %v176_v36  ;;  %242 = vst.msk [vmem:[%s1915_s3 + $0x38] sm:$0xff] %vm49_vm0, %v176_v36  ;;  %v171_v39 = vadd.f32 %v1189_v16, %v170_v37 }
  0xe6   :  { %v1498_v40 = vpop.eup %1497  ;;  %1519 = vtanh.f32 %v166_v30 }
  0xe7   :  { %1521 = vpow2.f32 %v1205_v38  ;;  %v1204_v41 = vmul.f32 -1.442695, %v171_v39  ;;  %241 = vst.msk [vmem:[%s1915_s3 + $0x30] sm:$0xff] %vm49_vm0, %v171_v39  ;;  %253 = vrot.lane.b32.xlu0 %v1498_v40, %s1574_s11  ;;  %1362 = vmatprep.mubr.msk.f32.mxu1 %vm49_vm0, %v171_v39  ;;  %s1575_s3 = smov 93  }
  0xe8   :  { %v1500_v42 = vpop.eup %1499  ;;  %1523 = vtanh.f32 %v171_v39  ;;  %1363 = vmatmul.mubr.msk.f32.gmra.mxu1 %vm49_vm0, %v176_v36 }
  0xe9   :  { %v1502_v43 = vpop.eup %1501  ;;  %1525 = vpow2.f32 %v1204_v41  ;;  %v212_v45 = vadd.f32 1.0, %v1500_v42  ;;  %1400 = vmatprep.mubr.msk.f32.mxu1 %vm1577_vm1, %v1576_v9 }
  0xea   :  { %v1504_v44 = vpop.eup %1503  ;;  %1527 = vtanh.f32 %v176_v36 }
  0xeb   :  { %v1506_v46 = vpop.eup %1505  ;;  %v211_v47 = vadd.f32 1.0, %v1504_v44  ;;  %251 = vrot.lane.b32.xlu0 %v1502_v43, %s1574_s11  ;;  %v1578_v43 = vmov 1.0   ;;  %v540_v44 = vlaneseq }
  0xec   :  { %v1508_v48 = vpop.eup %1507  ;;  %257 = vrot.lane.b32.xlu1 %v1506_v46, %s1574_s11 }
  0xed   :  { %1529 = vrcp.f32 %v211_v47  ;;  %v214_v50 = vadd.f32 1.0, %v1508_v48 }
  0xee   :  { %v1510_v49 = vpop.eup %1509  ;;  %1531 = vrcp.f32 %v212_v45  ;;  %v541_v45 = vshrl.u32 %v540_v44, 7 }
  0xef   :  { %v1512_v51 = vpop.eup %1511  ;;  %v213_v52 = vadd.f32 1.0, %v1510_v49 }
  0xf0   :  { %v1514_v53 = vpop.eup %1513  ;;  %255 = vrot.lane.b32.xlu1 %v1512_v51, %s1574_s11  ;;  %v1782_v46 = vsub.s32 0, %v541_v45 }
  0xf1   :  { %v1516_v54 = vpop.eup %1515  ;;  %1533 = vrcp.f32 %v213_v52  ;;  %v216_v56 = vadd.f32 1.0, %v1514_v53 }
  0xf2   :  { %v1518_v55 = vpop.eup %1517  ;;  %1535 = vrcp.f32 %v214_v50  ;;  %259 = vrot.lane.b32.xlu0 %v1516_v54, %s1574_s11 }
  0xf3   :  { %v1520_v57 = vpop.eup %1519  ;;  %v215_v58 = vadd.f32 1.0, %v1518_v55 }
  0xf4   :  { %v1522_v59 = vpop.eup %1521  ;;  %261 = vrot.lane.b32.xlu1 %v1520_v57, %s1574_s11 }
  0xf5   :  { %v1524_v60 = vpop.eup %1523  ;;  %1537 = vrcp.f32 %v215_v58  ;;  %v218_v62 = vadd.f32 1.0, %v1522_v59 }
  0xf6   :  { %v1526_v61 = vpop.eup %1525  ;;  %1539 = vrcp.f32 %v216_v56  ;;  %263 = vrot.lane.b32.xlu0 %v1524_v60, %s1574_s11 }
  0xf7   :  { %v1528_v63 = vpop.eup %1527  ;;  %v217_v0 = vadd.f32 1.0, %v1526_v61 }
  0xf8   :  { %265 = vrot.lane.b32.xlu1 %v1528_v63, %s1574_s11 }
  0xf9   :  { %1541 = vrcp.f32 %v217_v0 }
  0xfa   :  { %v1530_v1 = vpop.eup %1529  ;;  %1543 = vrcp.f32 %v218_v62 }
  0xfb   :  { %v1532_v2 = vpop.eup %1531  ;;  %292 = vrot.lane.b32.xlu0 %v1530_v1, %s1575_s3 }
  0xfc   :  { %294 = vrot.lane.b32.xlu1 %v1532_v2, %s1575_s3 }
  0xfe   :  { %v1534_v3 = vpop.eup %1533 }
  0xff   :  { %v1536_v4 = vpop.eup %1535  ;;  %296 = vrot.lane.b32.xlu0 %v1534_v3, %s1575_s3  ;;  %v680_v3 = vld [vmem:[#allocation2 + $0x70] sm:$0xff] }
 0x100   :  { %298 = vrot.lane.b32.xlu1 %v1536_v4, %s1575_s3  ;;  %v679_v4 = vld [vmem:[#allocation2 + $0x50] sm:$0xff] }
 0x102   :  { %v1538_v5 = vpop.eup %1537 }
 0x103   :  { %v1540_v6 = vpop.eup %1539  ;;  %300 = vrot.lane.b32.xlu0 %v1538_v5, %s1575_s3  ;;  %v678_v5 = vld [vmem:[#allocation2 + $0x30] sm:$0xff] }
 0x104   :  { %302 = vrot.lane.b32.xlu1 %v1540_v6, %s1575_s3  ;;  %v677_v6 = vld [vmem:[#allocation2 + $0x10] sm:$0xff] }
 0x106   :  { %v1542_v7 = vpop.eup %1541 }
 0x107   :  { %v1544_v8 = vpop.eup %1543  ;;  %304 = vrot.lane.b32.xlu0 %v1542_v7, %s1575_s3 }
 0x108   :  { %306 = vrot.lane.b32.xlu1 %v1544_v8, %s1575_s3 }
 0x159   :  { %v254_v10 = vpop.permute.xlu0 %253 }
 0x15a   :  { %277 = vst.msk [vmem:[%s1916_s4 + $0x8] sm:$0xff] %vm275_vm2, %v254_v10 }
 0x15d   :  { %v252_v11 = vpop.permute.xlu0 %251 }
 0x15e   :  { %v258_v12 = vpop.permute.xlu1 %257  ;;  %276 = vst.msk [vmem:[%s1916_s4] sm:$0xff] %vm275_vm2, %v252_v11 }
 0x15f   :  { %279 = vst.msk [vmem:[%s1916_s4 + $0x18] sm:$0xff] %vm275_vm2, %v258_v12 }
 0x162   :  { %v256_v13 = vpop.permute.xlu1 %255 }
 0x163   :  { %278 = vst.msk [vmem:[%s1916_s4 + $0x10] sm:$0xff] %vm275_vm2, %v256_v13 }
 0x164   :  { %v260_v14 = vpop.permute.xlu0 %259 }
 0x165   :  { %280 = vst.msk [vmem:[%s1916_s4 + $0x20] sm:$0xff] %vm275_vm2, %v260_v14  ;;  %v1217_v14 = vld [vmem:[%s1914_s2 + $0x2] ss:$0 sm:$0xff] }
 0x166   :  { %v262_v15 = vpop.permute.xlu1 %261 }
 0x167   :  { %281 = vst.msk [vmem:[%s1916_s4 + $0x28] sm:$0xff] %vm275_vm2, %v262_v15 }
 0x168   :  { %v264_v16 = vpop.permute.xlu0 %263 }
 0x169   :  { %282 = vst.msk [vmem:[%s1916_s4 + $0x30] sm:$0xff] %vm275_vm2, %v264_v16 }
 0x16a   :  { %v266_v17 = vpop.permute.xlu1 %265 }
 0x16b   :  { %283 = vst.msk [vmem:[%s1916_s4 + $0x38] sm:$0xff] %vm275_vm2, %v266_v17 }
 0x16d   :  { %v293_v18 = vpop.permute.xlu0 %292 }
 0x16e   :  { %v295_v19 = vpop.permute.xlu1 %294  ;;  %317 = vst.msk [vmem:[%s1917_s5] sm:$0xff] %vm316_vm3, %v293_v18 }
 0x16f   :  { %318 = vst.msk [vmem:[%s1917_s5 + $0x8] sm:$0xff] %vm316_vm3, %v295_v19  ;;  %v1218_v19 = vld [vmem:[%s1914_s2 + $0x3] ss:$0 sm:$0xff] }
 0x171   :  { %v297_v20 = vpop.permute.xlu0 %296 }
 0x172   :  { %v299_v21 = vpop.permute.xlu1 %298  ;;  %319 = vst.msk [vmem:[%s1917_s5 + $0x10] sm:$0xff] %vm316_vm3, %v297_v20 }
 0x173   :  { %320 = vst.msk [vmem:[%s1917_s5 + $0x18] sm:$0xff] %vm316_vm3, %v299_v21 }
 0x175   :  { %v301_v22 = vpop.permute.xlu0 %300 }
 0x176   :  { %v303_v23 = vpop.permute.xlu1 %302  ;;  %321 = vst.msk [vmem:[%s1917_s5 + $0x20] sm:$0xff] %vm316_vm3, %v301_v22 }
 0x177   :  { %322 = vst.msk [vmem:[%s1917_s5 + $0x28] sm:$0xff] %vm316_vm3, %v303_v23 }
 0x179   :  { %v305_v24 = vpop.permute.xlu0 %304 }
 0x17a   :  { %v307_v25 = vpop.permute.xlu1 %306  ;;  %323 = vst.msk [vmem:[%s1917_s5 + $0x30] sm:$0xff] %vm316_vm3, %v305_v24 }
 0x17b   :  { %324 = vst.msk [vmem:[%s1917_s5 + $0x38] sm:$0xff] %vm316_vm3, %v307_v25 }
 0x19c   :  { %v1355_v26 = vpop.f32.mrf.mxu1 }
 0x19d   :  { %v430_v41 = vadd.f32 %v1355_v26, %v1206_v32 }
 0x19e   :  { %v424_v27 = vpop.f32.mrf.mxu1 }
 0x19f   :  { %v425_v42 = vadd.f32 %v1206_v32, %v424_v27 }
 0x1a0   :  { %v1358_v28 = vpop.f32.mrf.mxu1 }
 0x1a1   :  { %v440_v39 = vadd.f32 %v1358_v28, %v1206_v32 }
 0x1a2   :  { %v434_v29 = vpop.f32.mrf.mxu1 }
 0x1a3   :  { %v435_v40 = vadd.f32 %v1206_v32, %v434_v29 }
 0x1a4   :  { %v1361_v30 = vpop.f32.mrf.mxu1 }
 0x1a5   :  { %v450_v37 = vadd.f32 %v1361_v30, %v1206_v32 }
 0x1a6   :  { %v444_v31 = vpop.f32.mrf.mxu1 }
 0x1a7   :  { %v445_v38 = vadd.f32 %v1206_v32, %v444_v31 }
 0x1a8   :  { %v1364_v33 = vpop.f32.mrf.mxu1 }
 0x1a9   :  { %v460_v34 = vadd.f32 %v1364_v33, %v1206_v32 }
 0x1aa   :  { %v454_v35 = vpop.f32.mrf.mxu1 }
 0x1ab   :  { %v455_v36 = vadd.f32 %v1206_v32, %v454_v35  ;;  %1366 = vmatpush3.msra.mxu0 %v460_v34 }
 0x1ac   :  { %1367 = vmatprep.subr.mxu0 %v1576_v9 }
 0x1ad   :  { %1368 = vmatpush3.msra.mxu0 %v455_v36 }
 0x1ae   :  { %1369 = vmatprep.subr.mxu0 %v1576_v9 }
 0x1af   :  { %1370 = vmatpush3.msra.mxu0 %v450_v37 }
 0x1b0   :  { %1371 = vmatprep.subr.mxu0 %v1576_v9 }
 0x1b1   :  { %1372 = vmatpush3.msra.mxu0 %v445_v38 }
 0x1b2   :  { %1373 = vmatprep.subr.mxu0 %v1576_v9 }
 0x1b3   :  { %1374 = vmatpush3.msra.mxu0 %v440_v39 }
 0x1b4   :  { %1375 = vmatprep.subr.mxu0 %v1576_v9 }
 0x1b5   :  { %1376 = vmatpush3.msra.mxu0 %v435_v40 }
 0x1b6   :  { %1377 = vmatprep.subr.mxu0 %v1576_v9 }
 0x1b7   :  { %1378 = vmatpush3.msra.mxu0 %v430_v41 }
 0x1b8   :  { %1379 = vmatprep.subr.mxu0 %v1576_v9 }
 0x1b9   :  { %1380 = vmatpush3.msra.mxu0 %v425_v42 }
 0x1ba   :  { %1382 = vmatmul.mubr.msk.f32.vlgmr.msra.gmra.mxu0 %vm465_vm4, %v1578_v43  ;;  %1403 = vmatprep.subr.mxu0 %v680_v3 }
 0x1bb   :  { %1404 = vmatpush3.msra.mxu0 %v680_v3 }
 0x1bc   :  { %1405 = vmatprep.subr.mxu0 %v679_v4 }
 0x1bd   :  { %1406 = vmatpush3.msra.mxu0 %v679_v4 }
 0x1be   :  { %1407 = vmatprep.subr.mxu0 %v678_v5 }
 0x1bf   :  { %1408 = vmatpush3.msra.mxu0 %v678_v5 }
 0x1c0   :  { %1409 = vmatprep.subr.mxu0 %v677_v6 }
 0x1c1   :  { %1410 = vmatpush3.msra.mxu0 %v677_v6 }
 0x1c2   :  { %1442 = vmatprep.subr.mxu0 %v1576_v9 }
 0x27a   :  { %v535_v47 = vpop.f32.mrf.mxu0 }
 0x27b   :  { %v539_v48 = vmul.f32 0.015625, %v535_v47 }
 0x27c   :  { %v1383_v49 = vpop.f32.mrf.mxu0 }
 0x27d   :  { %v543_v50 = vrot.slane %v539_v48, %v1782_v46 }
 0x27f   :  { %v1785_v51 = vsub.f32 %v460_v34, %v543_v50  ;;  %v1787_v52 = vsub.f32 %v455_v36, %v543_v50  ;;  %v549_v54 = vsub.f32 %v450_v37, %v543_v50  ;;  %v548_v56 = vsub.f32 %v445_v38, %v543_v50 }
 0x280   :  { %v547_v58 = vsub.f32 %v440_v39, %v543_v50  ;;  %v546_v60 = vsub.f32 %v435_v40, %v543_v50  ;;  %v545_v62 = vsub.f32 %v430_v41, %v543_v50  ;;  %v544_v0 = vsub.f32 %v425_v42, %v543_v50 }
 0x281   :  { %v559_v53 = vmul.f32 %v1785_v51, %v1785_v51  ;;  %v558_v55 = vmul.f32 %v1787_v52, %v1787_v52  ;;  %v557_v57 = vmul.f32 %v549_v54, %v549_v54  ;;  %v556_v59 = vmul.f32 %v548_v56, %v548_v56 }
 0x282   :  { %v555_v61 = vmul.f32 %v547_v58, %v547_v58  ;;  %v554_v63 = vmul.f32 %v546_v60, %v546_v60  ;;  %v553_v1 = vmul.f32 %v545_v62, %v545_v62  ;;  %v552_v2 = vmul.f32 %v544_v0, %v544_v0 }
 0x283   :  { %1385 = vmatpush3.msra.mxu1 %v559_v53 }
 0x284   :  { %1386 = vmatprep.subr.mxu1 %v1576_v9 }
 0x285   :  { %1387 = vmatpush3.msra.mxu1 %v558_v55 }
 0x286   :  { %1388 = vmatprep.subr.mxu1 %v1576_v9 }
 0x287   :  { %1389 = vmatpush3.msra.mxu1 %v557_v57 }
 0x288   :  { %1390 = vmatprep.subr.mxu1 %v1576_v9 }
 0x289   :  { %1391 = vmatpush3.msra.mxu1 %v556_v59 }
 0x28a   :  { %1392 = vmatprep.subr.mxu1 %v1576_v9 }
 0x28b   :  { %1393 = vmatpush3.msra.mxu1 %v555_v61 }
 0x28c   :  { %1394 = vmatprep.subr.mxu1 %v1576_v9 }
 0x28d   :  { %1395 = vmatpush3.msra.mxu1 %v554_v63 }
 0x28e   :  { %1396 = vmatprep.subr.mxu1 %v1576_v9 }
 0x28f   :  { %1397 = vmatpush3.msra.mxu1 %v553_v1 }
 0x290   :  { %1398 = vmatprep.subr.mxu1 %v1576_v9 }
 0x291   :  { %1399 = vmatpush3.msra.mxu1 %v552_v2 }
 0x292   :  { %1401 = vmatmul.mubr.msk.f32.vlgmr.msra.gmra.mxu1 %vm465_vm4, %v1578_v43  ;;  %1423 = vmatprep.subr.mxu1 %v1576_v9 }
 0x293   :  { %1439 = vmatprep.mubr.msk.f32.mxu1 %vm1577_vm1, %v1576_v9 }
 0x352   :  { %v626_v7 = vpop.f32.mrf.mxu1 }
 0x353   :  { %v630_v8 = vmul.f32 0.015625, %v626_v7 }
 0x354   :  { %v1402_v10 = vpop.f32.mrf.mxu1 }
 0x355   :  { %v631_v11 = vadd.f32 1e-05, %v630_v8 }
 0x357   :  { %1545 = vrsqrt.f32 %v631_v11 }
 0x364   :  { %v1546_v12 = vpop.eup %1545 }
 0x365   :  { %v636_v13 = vrot.slane %v1546_v12, %v1782_v46 }
 0x367   :  { %v637_v15 = vmul.f32 %v636_v13, %v544_v0  ;;  %v638_v16 = vmul.f32 %v636_v13, %v545_v62  ;;  %v639_v17 = vmul.f32 %v636_v13, %v546_v60  ;;  %v640_v18 = vmul.f32 %v636_v13, %v547_v58 }
 0x368   :  { %v641_v20 = vmul.f32 %v636_v13, %v548_v56  ;;  %v642_v25 = vmul.f32 %v636_v13, %v549_v54  ;;  %v643_v26 = vmul.f32 %v636_v13, %v1787_v52  ;;  %v644_v35 = vmul.f32 %v636_v13, %v1785_v51  ;;  %v1219_v56 = vld [vmem:[%s1914_s2 + $0x4] ss:$0 sm:$0xff] }
 0x369   :  { %v649_v21 = vmul.f32 %v1217_v14, %v637_v15  ;;  %v650_v22 = vmul.f32 %v1217_v14, %v638_v16  ;;  %v651_v23 = vmul.f32 %v1217_v14, %v639_v17  ;;  %v652_v24 = vmul.f32 %v1217_v14, %v640_v18 }
 0x36a   :  { %v653_v30 = vmul.f32 %v1217_v14, %v641_v20  ;;  %v654_v34 = vmul.f32 %v1217_v14, %v642_v25  ;;  %v655_v38 = vmul.f32 %v1217_v14, %v643_v26  ;;  %v656_v41 = vmul.f32 %v1217_v14, %v644_v35  ;;  %v1027_v25 = vld [vmem:[#allocation2 + $0x58] sm:$0xff] }
 0x36b   :  { %v661_v27 = vadd.f32 %v1218_v19, %v649_v21  ;;  %v662_v28 = vadd.f32 %v1218_v19, %v650_v22  ;;  %v663_v29 = vadd.f32 %v1218_v19, %v651_v23  ;;  %v664_v33 = vadd.f32 %v1218_v19, %v652_v24  ;;  %v1028_v24 = vld [vmem:[#allocation2 + $0x78] sm:$0xff] }
 0x36c   :  { %v665_v37 = vadd.f32 %v1218_v19, %v653_v30  ;;  %v666_v40 = vadd.f32 %v1218_v19, %v654_v34  ;;  %v667_v44 = vadd.f32 %v1218_v19, %v655_v38  ;;  %v668_v47 = vadd.f32 %v1218_v19, %v656_v41  ;;  %v1026_v26 = vld [vmem:[#allocation2 + $0x38] sm:$0xff] }
 0x36d   :  { %v669_v31 = vmax.f32 %v661_v27, 0.0  ;;  %v670_v32 = vmax.f32 %v662_v28, 0.0  ;;  %v671_v36 = vmax.f32 %v663_v29, 0.0  ;;  %v672_v39 = vmax.f32 %v664_v33, 0.0  ;;  %v1025_v27 = vld [vmem:[#allocation2 + $0x18] sm:$0xff] }
 0x36e   :  { %v673_v42 = vmax.f32 %v665_v37, 0.0  ;;  %v674_v45 = vmax.f32 %v666_v40, 0.0  ;;  %v675_v48 = vmax.f32 %v667_v44, 0.0  ;;  %v676_v49 = vmax.f32 %v668_v47, 0.0  ;;  %v1231_v37 = vld [vmem:[%s1914_s2 + $0x6] ss:$0 sm:$0xff] }
 0x36f   :  { %1411 = vmatprep.mubr.msk.f32.mxu0 %vm49_vm0, %v669_v31 }
 0x370   :  { %1412 = vmatmul.mubr.msk.f32.vlgmr.msra.gmra.mxu0 %vm49_vm0, %v670_v32  ;;  %v1230_v32 = vld [vmem:[%s1914_s2 + $0x5] ss:$0 sm:$0xff] }
 0x371   :  { %1414 = vmatprep.mubr.msk.f32.mxu0 %vm49_vm0, %v671_v36 }
 0x374   :  { %1415 = vmatmul.mubr.msk.f32.gmra.mxu0 %vm49_vm0, %v672_v39 }
 0x375   :  { %1417 = vmatprep.mubr.msk.f32.mxu0 %vm49_vm0, %v673_v42 }
 0x378   :  { %1418 = vmatmul.mubr.msk.f32.gmra.mxu0 %vm49_vm0, %v674_v45 }
 0x379   :  { %1420 = vmatprep.mubr.msk.f32.mxu0 %vm49_vm0, %v675_v48 }
 0x37c   :  { %1421 = vmatmul.mubr.msk.f32.gmra.mxu0 %vm49_vm0, %v676_v49 }
 0x37d   :  { %1458 = vmatprep.mubr.msk.f32.mxu0 %vm1577_vm1, %v1576_v9 }
 0x430   :  { %v1413_v50 = vpop.f32.mrf.mxu0 }
 0x431   :  { %v782_v1 = vadd.f32 %v1413_v50, %v1219_v56 }
 0x432   :  { %v776_v51 = vpop.f32.mrf.mxu0 }
 0x433   :  { %v777_v2 = vadd.f32 %v1219_v56, %v776_v51 }
 0x434   :  { %v1416_v52 = vpop.f32.mrf.mxu0 }
 0x435   :  { %v792_v63 = vadd.f32 %v1416_v52, %v1219_v56 }
 0x436   :  { %v786_v53 = vpop.f32.mrf.mxu0 }
 0x437   :  { %v787_v0 = vadd.f32 %v1219_v56, %v786_v53 }
 0x438   :  { %v1419_v54 = vpop.f32.mrf.mxu0 }
 0x439   :  { %v802_v61 = vadd.f32 %v1419_v54, %v1219_v56 }
 0x43a   :  { %v796_v55 = vpop.f32.mrf.mxu0 }
 0x43b   :  { %v797_v62 = vadd.f32 %v1219_v56, %v796_v55 }
 0x43c   :  { %v1422_v57 = vpop.f32.mrf.mxu0 }
 0x43d   :  { %v812_v58 = vadd.f32 %v1422_v57, %v1219_v56 }
 0x43e   :  { %v806_v59 = vpop.f32.mrf.mxu0 }
 0x43f   :  { %v807_v60 = vadd.f32 %v1219_v56, %v806_v59  ;;  %1424 = vmatpush3.msra.mxu1 %v812_v58 }
 0x440   :  { %1425 = vmatprep.subr.mxu1 %v1576_v9 }
 0x441   :  { %1426 = vmatpush3.msra.mxu1 %v807_v60 }
 0x442   :  { %1427 = vmatprep.subr.mxu1 %v1576_v9 }
 0x443   :  { %1428 = vmatpush3.msra.mxu1 %v802_v61 }
 0x444   :  { %1429 = vmatprep.subr.mxu1 %v1576_v9 }
 0x445   :  { %1430 = vmatpush3.msra.mxu1 %v797_v62 }
 0x446   :  { %1431 = vmatprep.subr.mxu1 %v1576_v9 }
 0x447   :  { %1432 = vmatpush3.msra.mxu1 %v792_v63 }
 0x448   :  { %1433 = vmatprep.subr.mxu1 %v1576_v9 }
 0x449   :  { %1434 = vmatpush3.msra.mxu1 %v787_v0 }
 0x44a   :  { %1435 = vmatprep.subr.mxu1 %v1576_v9 }
 0x44b   :  { %1436 = vmatpush3.msra.mxu1 %v782_v1 }
 0x44c   :  { %1437 = vmatprep.subr.mxu1 %v1576_v9 }
 0x44d   :  { %1438 = vmatpush3.msra.mxu1 %v777_v2 }
 0x44e   :  { %1440 = vmatmul.mubr.msk.f32.vlgmr.msra.gmra.mxu1 %vm465_vm4, %v1578_v43  ;;  %1481 = vmatprep.subr.mxu1 %v1028_v24 }
 0x44f   :  { %1485 = vmatpush3.msra.mxu1 %v1028_v24 }
 0x450   :  { %1482 = vmatprep.subr.mxu1 %v1027_v25 }
 0x451   :  { %1486 = vmatpush3.msra.mxu1 %v1027_v25 }
 0x452   :  { %1483 = vmatprep.subr.mxu1 %v1026_v26 }
 0x453   :  { %1487 = vmatpush3.msra.mxu1 %v1026_v26 }
 0x454   :  { %1484 = vmatprep.subr.mxu1 %v1025_v27 }
 0x455   :  { %1488 = vmatpush3.msra.mxu1 %v1025_v27 }
 0x50e   :  { %v883_v3 = vpop.f32.mrf.mxu1 }
 0x50f   :  { %v887_v4 = vmul.f32 0.015625, %v883_v3  ;;  %v1232_v3 = vld [vmem:[%s1914_s2 + $0x7] ss:$0 sm:$0xff] }
 0x510   :  { %v1441_v5 = vpop.f32.mrf.mxu1 }
 0x511   :  { %v891_v6 = vrot.slane %v887_v4, %v1782_v46 }
 0x513   :  { %v1838_v7 = vsub.f32 %v812_v58, %v891_v6  ;;  %v1840_v8 = vsub.f32 %v807_v60, %v891_v6  ;;  %v1844_v11 = vsub.f32 %v802_v61, %v891_v6  ;;  %v896_v13 = vsub.f32 %v797_v62, %v891_v6 }
 0x514   :  { %v895_v15 = vsub.f32 %v792_v63, %v891_v6  ;;  %v894_v17 = vsub.f32 %v787_v0, %v891_v6  ;;  %v893_v19 = vsub.f32 %v782_v1, %v891_v6  ;;  %v892_v21 = vsub.f32 %v777_v2, %v891_v6 }
 0x515   :  { %v907_v10 = vmul.f32 %v1838_v7, %v1838_v7  ;;  %v906_v12 = vmul.f32 %v1840_v8, %v1840_v8  ;;  %v905_v14 = vmul.f32 %v1844_v11, %v1844_v11  ;;  %v904_v16 = vmul.f32 %v896_v13, %v896_v13 }
 0x516   :  { %v903_v18 = vmul.f32 %v895_v15, %v895_v15  ;;  %v902_v20 = vmul.f32 %v894_v17, %v894_v17  ;;  %v901_v22 = vmul.f32 %v893_v19, %v893_v19  ;;  %v900_v23 = vmul.f32 %v892_v21, %v892_v21 }
 0x517   :  { %1443 = vmatpush3.msra.mxu0 %v907_v10 }
 0x518   :  { %1444 = vmatprep.subr.mxu0 %v1576_v9 }
 0x519   :  { %1445 = vmatpush3.msra.mxu0 %v906_v12 }
 0x51a   :  { %1446 = vmatprep.subr.mxu0 %v1576_v9 }
 0x51b   :  { %1447 = vmatpush3.msra.mxu0 %v905_v14 }
 0x51c   :  { %1448 = vmatprep.subr.mxu0 %v1576_v9 }
 0x51d   :  { %1449 = vmatpush3.msra.mxu0 %v904_v16 }
 0x51e   :  { %1450 = vmatprep.subr.mxu0 %v1576_v9 }
 0x51f   :  { %1451 = vmatpush3.msra.mxu0 %v903_v18 }
 0x520   :  { %1452 = vmatprep.subr.mxu0 %v1576_v9 }
 0x521   :  { %1453 = vmatpush3.msra.mxu0 %v902_v20 }
 0x522   :  { %1454 = vmatprep.subr.mxu0 %v1576_v9 }
 0x523   :  { %1455 = vmatpush3.msra.mxu0 %v901_v22 }
 0x524   :  { %1456 = vmatprep.subr.mxu0 %v1576_v9 }
 0x525   :  { %1457 = vmatpush3.msra.mxu0 %v900_v23 }
 0x526   :  { %1459 = vmatmul.mubr.msk.f32.vlgmr.msra.gmra.mxu0 %vm465_vm4, %v1578_v43  ;;  %1461 = vmatprep.subr.mxu0 %v1028_v24 }
 0x527   :  { %1462 = vmatpush3.msra.mxu0 %v1028_v24 }
 0x528   :  { %1463 = vmatprep.subr.mxu0 %v1027_v25 }
 0x529   :  { %1464 = vmatpush3.msra.mxu0 %v1027_v25 }
 0x52a   :  { %1465 = vmatprep.subr.mxu0 %v1026_v26 }
 0x52b   :  { %1466 = vmatpush3.msra.mxu0 %v1026_v26 }
 0x52c   :  { %1467 = vmatprep.subr.mxu0 %v1025_v27 }
 0x52d   :  { %1468 = vmatpush3.msra.mxu0 %v1025_v27 }
 0x5e6   :  { %v974_v9 = vpop.f32.mrf.mxu0 }
 0x5e7   :  { %v978_v43 = vmul.f32 0.015625, %v974_v9 }
 0x5e8   :  { %v1460_v28 = vpop.f32.mrf.mxu0 }
 0x5e9   :  { %v979_v29 = vadd.f32 1e-05, %v978_v43 }
 0x5eb   :  { %1547 = vrsqrt.f32 %v979_v29 }
 0x5f8   :  { %v1548_v30 = vpop.eup %1547 }
 0x5f9   :  { %v984_v31 = vrot.slane %v1548_v30, %v1782_v46 }
 0x5fb   :  { %v985_v33 = vmul.f32 %v984_v31, %v892_v21  ;;  %v987_v34 = vmul.f32 %v984_v31, %v894_v17  ;;  %v986_v35 = vmul.f32 %v984_v31, %v893_v19  ;;  %v988_v36 = vmul.f32 %v984_v31, %v895_v15 }
 0x5fc   :  { %v989_v38 = vmul.f32 %v984_v31, %v896_v13  ;;  %v990_v39 = vmul.f32 %v984_v31, %v1844_v11  ;;  %v991_v40 = vmul.f32 %v984_v31, %v1840_v8  ;;  %v992_v49 = vmul.f32 %v984_v31, %v1838_v7 }
 0x5fd   :  { %v997_v41 = vmul.f32 %v1230_v32, %v985_v33  ;;  %v999_v42 = vmul.f32 %v1230_v32, %v987_v34  ;;  %v998_v46 = vmul.f32 %v1230_v32, %v986_v35  ;;  %v1000_v44 = vmul.f32 %v1230_v32, %v988_v36 }
 0x5fe   :  { %v1001_v45 = vmul.f32 %v1230_v32, %v989_v38  ;;  %v1002_v47 = vmul.f32 %v1230_v32, %v990_v39  ;;  %v1003_v48 = vmul.f32 %v1230_v32, %v991_v40  ;;  %v1004_v60 = vmul.f32 %v1230_v32, %v992_v49 }
 0x5ff   :  { %v1009_v50 = vadd.f32 %v1231_v37, %v997_v41  ;;  %v1011_v51 = vadd.f32 %v1231_v37, %v999_v42  ;;  %v1010_v52 = vadd.f32 %v1231_v37, %v998_v46  ;;  %v1012_v53 = vadd.f32 %v1231_v37, %v1000_v44 }
 0x600   :  { %v1013_v54 = vadd.f32 %v1231_v37, %v1001_v45  ;;  %v1014_v59 = vadd.f32 %v1231_v37, %v1002_v47  ;;  %v1015_v62 = vadd.f32 %v1231_v37, %v1003_v48  ;;  %v1016_v0 = vadd.f32 %v1231_v37, %v1004_v60 }
 0x601   :  { %v1017_v55 = vmax.f32 %v1009_v50, 0.0  ;;  %v1019_v56 = vmax.f32 %v1011_v51, 0.0  ;;  %v1018_v57 = vmax.f32 %v1010_v52, 0.0  ;;  %v1020_v58 = vmax.f32 %v1012_v53, 0.0 }
 0x602   :  { %v1021_v61 = vmax.f32 %v1013_v54, 0.0  ;;  %v1022_v63 = vmax.f32 %v1014_v59, 0.0  ;;  %v1023_v1 = vmax.f32 %v1015_v62, 0.0  ;;  %v1024_v2 = vmax.f32 %v1016_v0, 0.0 }
 0x603   :  { %1469 = vmatprep.mubr.msk.f32.mxu0 %vm49_vm0, %v1017_v55  ;;  %1472 = vmatprep.mubr.msk.f32.mxu1 %vm49_vm0, %v1019_v56 }
 0x604   :  { %1470 = vmatmul.mubr.msk.f32.vlgmr.msra.gmra.mxu0 %vm49_vm0, %v1018_v57  ;;  %1473 = vmatmul.mubr.msk.f32.vlgmr.msra.gmra.mxu1 %vm49_vm0, %v1020_v58 }
 0x605   :  { %1475 = vmatprep.mubr.msk.f32.mxu1 %vm49_vm0, %v1021_v61 }
 0x608   :  { %1476 = vmatmul.mubr.msk.f32.gmra.mxu1 %vm49_vm0, %v1022_v63 }
 0x609   :  { %1478 = vmatprep.mubr.msk.f32.mxu1 %vm49_vm0, %v1023_v1 }
 0x60c   :  { %1479 = vmatmul.mubr.msk.f32.gmra.mxu1 %vm49_vm0, %v1024_v2 }
 0x6c4   :  { %v1471_v4 = vpop.f32.mrf.mxu0  ;;  %v1474_v5 = vpop.f32.mrf.mxu1 }
 0x6c5   :  { %v1130_v6 = vadd.f32 %v1471_v4, %v1232_v3  ;;  %v1140_v7 = vadd.f32 %v1474_v5, %v1232_v3 }
 0x6c6   :  { %v1124_v8 = vpop.f32.mrf.mxu0  ;;  %v1134_v10 = vpop.f32.mrf.mxu1 }
 0x6c7   :  { %1165 = vst.msk [vmem:[%s1918_s6 + $0x8] sm:$0xff] %vm1163_vm5, %v1130_v6  ;;  %1167 = vst.msk [vmem:[%s1918_s6 + $0x18] sm:$0xff] %vm1163_vm5, %v1140_v7  ;;  %v1125_v11 = vadd.f32 %v1232_v3, %v1124_v8  ;;  %v1135_v12 = vadd.f32 %v1232_v3, %v1134_v10 }
 0x6c8   :  { %v1477_v13 = vpop.f32.mrf.mxu1 }
 0x6c9   :  { %1164 = vst.msk [vmem:[%s1918_s6] sm:$0xff] %vm1163_vm5, %v1125_v11  ;;  %1166 = vst.msk [vmem:[%s1918_s6 + $0x10] sm:$0xff] %vm1163_vm5, %v1135_v12  ;;  %v1150_v14 = vadd.f32 %v1477_v13, %v1232_v3 }
 0x6ca   :  { %v1144_v15 = vpop.f32.mrf.mxu1 }
 0x6cb   :  { %1169 = vst.msk [vmem:[%s1918_s6 + $0x28] sm:$0xff] %vm1163_vm5, %v1150_v14  ;;  %v1145_v16 = vadd.f32 %v1232_v3, %v1144_v15 }
 0x6cc   :  { %v1480_v17 = vpop.f32.mrf.mxu1 }
 0x6cd   :  { %1168 = vst.msk [vmem:[%s1918_s6 + $0x20] sm:$0xff] %vm1163_vm5, %v1145_v16  ;;  %v1160_v18 = vadd.f32 %v1480_v17, %v1232_v3 }
 0x6ce   :  { %v1154_v19 = vpop.f32.mrf.mxu1 }
 0x6cf   :  { %1171 = vst.msk [vmem:[%s1918_s6 + $0x38] sm:$0xff] %vm1163_vm5, %v1160_v18  ;;  %v1155_v20 = vadd.f32 %v1232_v3, %v1154_v19 }
 0x6d1   :  { %1170 = vst.msk [vmem:[%s1918_s6 + $0x30] sm:$0xff] %vm1163_vm5, %v1155_v20 }
 0x6d2   :  { %1188 = vsyncpa [#allocation3], 1 }

</bundles_post_ra>
